<compile_context>
chip_gen: v7x
topology: tpu7x:2x2x1
jax: 0.10.0
libtpu: 0.0.40
codegen_flags: <defaults>
</compile_context>

<pallas_src>
import jax
import jax.numpy as jnp
from jax.experimental import pallas as pl


_BN_EPS = 1e-5


def _fold_bn_conv_packed(params, eps=_BN_EPS):
    """Fold eval-mode BN into the 1x1 conv; pack weight+bias into one operand.

    Returns (Cout, Cin+1) f32: columns [0, Cin) are the BN-scaled conv weight,
    column Cin is the BN bias.
    """
    scale = params["gamma"] / jnp.sqrt(params["running_var"] + eps)      # (Cout,)
    bias = params["beta"] - params["running_mean"] * scale               # (Cout,)
    w_folded = params["weight"] * scale[:, None]                         # (Cout, Cin)
    return jnp.concatenate([w_folded, bias[:, None]], axis=1).astype(jnp.float32)


def _conv1x1_bn_xla(x_nchw, params, eps=_BN_EPS):
    """Plain-XLA fallback for lane-sparse (tiny / cropped) branches."""
    scale = params["gamma"] / jnp.sqrt(params["running_var"] + eps)
    bias = params["beta"] - params["running_mean"] * scale
    y = jnp.einsum("nchw,oc->nohw", x_nchw, params["weight"])
    return y * scale[None, :, None, None] + bias[None, :, None, None]


def _fused_conv1x1_bn_pallas(xs, wbs):
    """One pallas_call computing conv1x1+BN for every eligible branch.

    xs  : list of (N, Cin, HW) bf16 arrays  (HW lane-dense, multiple of 128)
    wbs : list of (Cout, Cin+1) f32 packed weight|bias
    Returns a list of (N, Cout, HW) f32 arrays.
    """
    nb = len(xs)
    shapes = []
    for b in range(nb):
        n, cin, hw = xs[b].shape
        cout = wbs[b].shape[0]
        assert wbs[b].shape[1] == cin + 1
        shapes.append((n, cin, cout, hw))

    def kernel(*refs):
        x_refs = refs[:nb]
        wb_refs = refs[nb:2 * nb]
        o_refs = refs[2 * nb:]
        for b in range(nb):
            n, cin, cout, hw = shapes[b]
            wb = wb_refs[b][...]                            # (Cout, Cin+1) f32
            w_bf = wb[:, :cin].astype(jnp.bfloat16)         # MXU LHS (tiny cast)
            bias = wb[:, cin:cin + 1]                       # (Cout, 1) f32
            # Hoisted: JAX does not CSE broadcast_in_dim; do it once per branch.
            bias_b = jnp.broadcast_to(bias, (cout, hw))
            for i in range(n):                              # small N: static unroll
                # (Cout, Cin) @ (Cin, HW): bf16 MXU inputs, f32 accumulation,
                # HW on the lane axis -> unmasked lane-dense stores.
                y = jnp.dot(w_bf, x_refs[b][i],
                            preferred_element_type=jnp.float32)
                o_refs[b][i] = (y + bias_b).astype(o_refs[b].dtype)

    in_specs = []
    out_specs = []
    out_shape = []
    flops = 0
    bytes_accessed = 0
    for b in range(nb):
        n, cin, cout, hw = shapes[b]
        in_specs.append(pl.BlockSpec((n, cin, hw), lambda: (0, 0, 0)))
        flops += 2 * n * cout * cin * hw
        bytes_accessed += int(xs[b].size) * int(xs[b].dtype.itemsize)
    for b in range(nb):
        n, cin, cout, hw = shapes[b]
        in_specs.append(pl.BlockSpec((cout, cin + 1), lambda: (0, 0)))
        bytes_accessed += int(wbs[b].size) * 4
    for b in range(nb):
        n, cin, cout, hw = shapes[b]
        out_specs.append(pl.BlockSpec((n, cout, hw), lambda: (0, 0, 0)))
        out_shape.append(jax.ShapeDtypeStruct((n, cout, hw), jnp.float32))
        bytes_accessed += n * cout * hw * 4

    outs = pl.pallas_call(
        kernel,
        out_shape=tuple(out_shape),
        in_specs=in_specs,
        out_specs=tuple(out_specs),
        cost_estimate=pl.CostEstimate(flops=flops, transcendentals=0,
                                      bytes_accessed=bytes_accessed),
    )(*(list(xs) + list(wbs)))

    if isinstance(outs, (tuple, list)):
        return list(outs)
    return [outs]


def adjust_all_layer(features, all_params, in_channels, out_channels,
                     eps=_BN_EPS):
    """AdjustAllLayer forward (NCHW). `features` is an array (num==1) or list."""
    num = len(out_channels)
    single = (num == 1)
    feats = [features] if single else list(features)

    results = [None] * num
    pallas_idx, pallas_xs, pallas_wbs, pallas_meta = [], [], [], []

    for i in range(num):
        x = feats[i]
        needs_conv = in_channels[i] != out_channels[i]

        # Crop (spec: applied when width < 16). Since the 1x1 conv preserves
        # spatial size, cropping before the conv is equivalent and cheaper.
        if x.shape[3] < 16:
            l = 2
            r = l + 4
            x = x[:, :, l:r, l:r]

        if not needs_conv:
            results[i] = x            # identity branch: pure slicing, stays in XLA
            continue

        n, cin, h, w = x.shape
        hw = h * w
        if hw >= 128 and hw % 128 == 0:
            # Lane-dense branch -> fused Pallas conv+BN.
            wb = _fold_bn_conv_packed(all_params[i], eps)
            x_flat = x.reshape(n, cin, hw).astype(jnp.bfloat16)  # bf16 MXU input
            pallas_idx.append(i)
            pallas_xs.append(x_flat)
            pallas_wbs.append(wb)
            pallas_meta.append((n, out_channels[i], h, w))
        else:
            # Lane-sparse (cropped / tiny) branch: XLA fusion beats a Pallas
            # launch here, so keep it out of the kernel by design.
            results[i] = _conv1x1_bn_xla(x, all_params[i], eps)

    if pallas_idx:
        outs = _fused_conv1x1_bn_pallas(pallas_xs, pallas_wbs)
        for k, i in enumerate(pallas_idx):
            n, cout, h, w = pallas_meta[k]
            results[i] = outs[k].reshape(n, cout, h, w)

    return results[0] if single else results


def make_params(key, in_ch, out_ch):
    """Deterministic synthetic Conv2d(1x1, bias=False) + BatchNorm2d params."""
    kw, kg, kb, km, kv = jax.random.split(key, 5)
    return {
        "weight": jax.random.normal(kw, (out_ch, in_ch), jnp.float32) * 0.1,
        "gamma": 1.0 + 0.1 * jax.random.normal(kg, (out_ch,), jnp.float32),
        "beta": 0.1 * jax.random.normal(kb, (out_ch,), jnp.float32),
        "running_mean": 0.1 * jax.random.normal(km, (out_ch,), jnp.float32),
        "running_var": jnp.abs(jax.random.normal(kv, (out_ch,), jnp.float32)) + 0.5,
    }


def _pallas_branch_ref(x, p, eps=_BN_EPS):
    """bf16-consistent plain-JAX reference for a Pallas conv+BN branch."""
    scale = p["gamma"] / jnp.sqrt(p["running_var"] + eps)
    bias = p["beta"] - p["running_mean"] * scale
    w_bf = (p["weight"] * scale[:, None]).astype(jnp.bfloat16)
    x_bf = x.astype(jnp.bfloat16)
    y = jnp.einsum("nchw,oc->nohw", x_bf, w_bf,
                   preferred_element_type=jnp.float32)
    return y + bias[None, :, None, None]


if __name__ == "__main__":
    key = jax.random.PRNGKey(0)
    k0, k1, k2, kx0, kx1, kx2, kx3 = jax.random.split(key, 7)

    # Branch 0: conv+BN, 16x16 (lane-dense)            -> fused Pallas call
    # Branch 1: conv+BN, 16x16 (lane-dense)            -> fused Pallas call
    # Branch 2: conv+BN, 8x8 -> crop to 4x4 (tiny)     -> plain-XLA fallback
    # Branch 3: identity (in==out), 8x8 -> crop to 4x4 -> pure slicing
    in_channels = [4, 8, 8, 8]
    out_channels = [8, 16, 4, 8]

    params = [
        make_params(k0, in_channels[0], out_channels[0]),
        make_params(k1, in_channels[1], out_channels[1]),
        make_params(k2, in_channels[2], out_channels[2]),
        None,  # identity branch has no conv/BN params
    ]

    x0 = jax.random.normal(kx0, (2, 4, 16, 16), jnp.float32)
    x1 = jax.random.normal(kx1, (2, 8, 16, 16), jnp.float32)
    x2 = jax.random.normal(kx2, (2, 8, 8, 8), jnp.float32)
    x3 = jax.random.normal(kx3, (2, 8, 8, 8), jnp.float32)

    outs = adjust_all_layer([x0, x1, x2, x3], params, in_channels, out_channels)
    outs = [jax.block_until_ready(o) for o in outs]

    # Shape checks.
    assert outs[0].shape == (2, 8, 16, 16)
    assert outs[1].shape == (2, 16, 16, 16)
    assert outs[2].shape == (2, 4, 4, 4)
    assert outs[3].shape == (2, 8, 4, 4)

    # Pallas branches vs. bf16-consistent reference (tight) and f32 ref (loose).
    for xb, pb, ob in ((x0, params[0], outs[0]), (x1, params[1], outs[1])):
        ref_bf = _pallas_branch_ref(xb, pb)
        ref_f32 = _conv1x1_bn_xla(xb, pb)
        assert jnp.max(jnp.abs(ob - ref_bf)) < 1e-3
        assert jnp.max(jnp.abs(ob - ref_f32)) < 5e-2

    # Fallback conv branch: original op order (conv then crop).
    ref2 = _conv1x1_bn_xla(x2, params[2])[:, :, 2:6, 2:6]
    assert jnp.max(jnp.abs(outs[2] - ref2)) < 1e-5

    # Identity + crop branch.
    assert jnp.allclose(outs[3], x3[:, :, 2:6, 2:6])

    print("KERNEL_OK")
</pallas_src>

<mosaic_0001>
module attributes {stable_mosaic.version = 11 : i64} {
  func.func @kernel(%arg0: memref<2x4x256xbf16, #tpu.memory_space<vmem>>, %arg1: memref<2x8x256xbf16, #tpu.memory_space<vmem>>, %arg2: memref<8x5xf32, #tpu.memory_space<vmem>>, %arg3: memref<16x9xf32, #tpu.memory_space<vmem>>, %arg4: memref<2x8x256xf32, #tpu.memory_space<vmem>>, %arg5: memref<2x16x256xf32, #tpu.memory_space<vmem>>) attributes {dimension_semantics = [], scalar_prefetch = 0 : i64, scratch_operands = 0 : i64, tpu.core_type = #tpu.core_type<tc>} {
    %c0 = arith.constant 0 : index
    %c0_0 = arith.constant 0 : index
    %0 = vector.load %arg2[%c0, %c0_0] : memref<8x5xf32, #tpu.memory_space<vmem>>, vector<8x5xf32>
    %1 = vector.extract_strided_slice %0 {offsets = [0, 0], sizes = [8, 4], strides = [1, 1]} : vector<8x5xf32> to vector<8x4xf32>
    %2 = arith.truncf %1 : vector<8x4xf32> to vector<8x4xbf16>
    %3 = vector.extract_strided_slice %0 {offsets = [0, 4], sizes = [8, 1], strides = [1, 1]} : vector<8x5xf32> to vector<8x1xf32>
    %4 = vector.shape_cast %3 : vector<8x1xf32> to vector<8x1xf32>
    %5 = vector.broadcast %4 : vector<8x1xf32> to vector<8x256xf32>
    %c0_1 = arith.constant 0 : index
    %c0_2 = arith.constant 0 : index
    %c0_3 = arith.constant 0 : index
    %6 = vector.load %arg0[%c0_1, %c0_2, %c0_3] : memref<2x4x256xbf16, #tpu.memory_space<vmem>>, vector<1x4x256xbf16>
    %7 = vector.shape_cast %6 : vector<1x4x256xbf16> to vector<4x256xbf16>
    %cst = arith.constant dense<0.000000e+00> : vector<8x256xf32>
    %8 = tpu.matmul %2, %7, %cst {dimension_numbers = #tpu.dot_dimension_numbers<[1], [0], [0], [1], [0, 0, 1, 1], [], []>} : vector<8x4xbf16>, vector<4x256xbf16>, vector<8x256xf32> -> vector<8x256xf32>
    %9 = arith.addf %8, %5 : vector<8x256xf32>
    %c0_4 = arith.constant 0 : index
    %c0_5 = arith.constant 0 : index
    %c0_6 = arith.constant 0 : index
    %10 = vector.load %arg4[%c0_4, %c0_5, %c0_6] : memref<2x8x256xf32, #tpu.memory_space<vmem>>, vector<1x8x256xf32>
    %11 = vector.shape_cast %10 : vector<1x8x256xf32> to vector<8x256xf32>
    %12 = vector.shape_cast %9 : vector<8x256xf32> to vector<1x8x256xf32>
    tpu.vector_store %arg4[%c0_4, %c0_5, %c0_6], %12 {strides = array<i32>} : memref<2x8x256xf32, #tpu.memory_space<vmem>>, vector<1x8x256xf32>,
    %c1 = arith.constant 1 : index
    %c0_7 = arith.constant 0 : index
    %c0_8 = arith.constant 0 : index
    %13 = vector.load %arg0[%c1, %c0_7, %c0_8] : memref<2x4x256xbf16, #tpu.memory_space<vmem>>, vector<1x4x256xbf16>
    %14 = vector.shape_cast %13 : vector<1x4x256xbf16> to vector<4x256xbf16>
    %cst_9 = arith.constant dense<0.000000e+00> : vector<8x256xf32>
    %15 = tpu.matmul %2, %14, %cst_9 {dimension_numbers = #tpu.dot_dimension_numbers<[1], [0], [0], [1], [0, 0, 1, 1], [], []>} : vector<8x4xbf16>, vector<4x256xbf16>, vector<8x256xf32> -> vector<8x256xf32>
    %16 = arith.addf %15, %5 : vector<8x256xf32>
    %c1_10 = arith.constant 1 : index
    %c0_11 = arith.constant 0 : index
    %c0_12 = arith.constant 0 : index
    %17 = vector.load %arg4[%c1_10, %c0_11, %c0_12] : memref<2x8x256xf32, #tpu.memory_space<vmem>>, vector<1x8x256xf32>
    %18 = vector.shape_cast %17 : vector<1x8x256xf32> to vector<8x256xf32>
    %19 = vector.shape_cast %16 : vector<8x256xf32> to vector<1x8x256xf32>
    tpu.vector_store %arg4[%c1_10, %c0_11, %c0_12], %19 {strides = array<i32>} : memref<2x8x256xf32, #tpu.memory_space<vmem>>, vector<1x8x256xf32>,
    %c0_13 = arith.constant 0 : index
    %c0_14 = arith.constant 0 : index
    %20 = vector.load %arg3[%c0_13, %c0_14] : memref<16x9xf32, #tpu.memory_space<vmem>>, vector<16x9xf32>
    %21 = vector.extract_strided_slice %20 {offsets = [0, 0], sizes = [16, 8], strides = [1, 1]} : vector<16x9xf32> to vector<16x8xf32>
    %22 = arith.truncf %21 : vector<16x8xf32> to vector<16x8xbf16>
    %23 = vector.extract_strided_slice %20 {offsets = [0, 8], sizes = [16, 1], strides = [1, 1]} : vector<16x9xf32> to vector<16x1xf32>
    %24 = vector.shape_cast %23 : vector<16x1xf32> to vector<16x1xf32>
    %25 = vector.broadcast %24 : vector<16x1xf32> to vector<16x256xf32>
    %c0_15 = arith.constant 0 : index
    %c0_16 = arith.constant 0 : index
    %c0_17 = arith.constant 0 : index
    %26 = vector.load %arg1[%c0_15, %c0_16, %c0_17] : memref<2x8x256xbf16, #tpu.memory_space<vmem>>, vector<1x8x256xbf16>
    %27 = vector.shape_cast %26 : vector<1x8x256xbf16> to vector<8x256xbf16>
    %cst_18 = arith.constant dense<0.000000e+00> : vector<16x256xf32>
    %28 = tpu.matmul %22, %27, %cst_18 {dimension_numbers = #tpu.dot_dimension_numbers<[1], [0], [0], [1], [0, 0, 1, 1], [], []>} : vector<16x8xbf16>, vector<8x256xbf16>, vector<16x256xf32> -> vector<16x256xf32>
    %29 = arith.addf %28, %25 : vector<16x256xf32>
    %c0_19 = arith.constant 0 : index
    %c0_20 = arith.constant 0 : index
    %c0_21 = arith.constant 0 : index
    %30 = vector.load %arg5[%c0_19, %c0_20, %c0_21] : memref<2x16x256xf32, #tpu.memory_space<vmem>>, vector<1x16x256xf32>
    %31 = vector.shape_cast %30 : vector<1x16x256xf32> to vector<16x256xf32>
    %32 = vector.shape_cast %29 : vector<16x256xf32> to vector<1x16x256xf32>
    tpu.vector_store %arg5[%c0_19, %c0_20, %c0_21], %32 {strides = array<i32>} : memref<2x16x256xf32, #tpu.memory_space<vmem>>, vector<1x16x256xf32>,
    %c1_22 = arith.constant 1 : index
    %c0_23 = arith.constant 0 : index
    %c0_24 = arith.constant 0 : index
    %33 = vector.load %arg1[%c1_22, %c0_23, %c0_24] : memref<2x8x256xbf16, #tpu.memory_space<vmem>>, vector<1x8x256xbf16>
    %34 = vector.shape_cast %33 : vector<1x8x256xbf16> to vector<8x256xbf16>
    %cst_25 = arith.constant dense<0.000000e+00> : vector<16x256xf32>
    %35 = tpu.matmul %22, %34, %cst_25 {dimension_numbers = #tpu.dot_dimension_numbers<[1], [0], [0], [1], [0, 0, 1, 1], [], []>} : vector<16x8xbf16>, vector<8x256xbf16>, vector<16x256xf32> -> vector<16x256xf32>
    %36 = arith.addf %35, %25 : vector<16x256xf32>
    %c1_26 = arith.constant 1 : index
    %c0_27 = arith.constant 0 : index
    %c0_28 = arith.constant 0 : index
    %37 = vector.load %arg5[%c1_26, %c0_27, %c0_28] : memref<2x16x256xf32, #tpu.memory_space<vmem>>, vector<1x16x256xf32>
    %38 = vector.shape_cast %37 : vector<1x16x256xf32> to vector<16x256xf32>
    %39 = vector.shape_cast %36 : vector<16x256xf32> to vector<1x16x256xf32>
    tpu.vector_store %arg5[%c1_26, %c0_27, %c0_28], %39 {strides = array<i32>} : memref<2x16x256xf32, #tpu.memory_space<vmem>>, vector<1x16x256xf32>,
    return
  }
}

</mosaic_0001>

<bundles_post_ra>
// kernel: tpu_custom_call.1
= control target key start
LH: loop header
LB: loop body
LE: loop exit
PB: predicated region body
PF: predicated region fallthrough
CT: control target
= control target key end

     0   :  { %11 = vsyncpa [#allocation3], 0  ;;  %s702_s0 = inlined_call_operand.hbm [shape: bf16[2,4,256], index: 0, kind: input, shape index: {}]   ;;  %s703_s1 = inlined_call_operand.hbm [shape: bf16[2,8,256], index: 1, kind: input, shape index: {}]   ;;  %s704_s2 = inlined_call_operand.hbm [shape: f32[8,5], index: 2, kind: input, shape index: {}]   ;;  %s705_s3 = inlined_call_operand.hbm [shape: f32[16,9], index: 3, kind: input, shape index: {}]   ;;  %s706_s4 = inlined_call_operand.hbm [shape: f32[2,8,256], index: 4, kind: output, shape index: {0}]   ;;  %s707_s5 = inlined_call_operand.hbm [shape: f32[2,16,256], index: 5, kind: output, shape index: {1}]  }
   0x1   :  { %12 = vsyncpa [#allocation6], 0 }
   0x2   :  { %13 = vsyncpa [#allocation9], 0 }
   0x3   :  { %14 = vsyncpa [#allocation4], 0 }
   0x4   :  { %15 = vsyncpa [#allocation12], 0  ;;  %s558_s18 = smov [#allocation5]   ;;  %s416_s22 = scalar_lea.hbm %s703_s1, 256 }
   0x5   :  { %s33_s19 = sshll.u32 %s558_s18, 4  ;;  %p417_p0 = scmp.ne.s32.totalorder %s703_s1, %s416_s22  ;;  %s34_s19 = int_to_ptr.vmem [resolvable:$true] %s33_s19 }
   0x6   :  { %p420_p1 = scmp.lt.u32.totalorder %s416_s22, %s703_s1 }
   0x8   :  { %p422_p2 = pnand %p420_p1, %p417_p0 }
   0xa   :  { %425 = shalt.err (!%p422_p2)
}
   0xb   :  { %s426_s27 = scalar_lea.vmem %s34_s19, 256  ;;  %p431_p4 = scmp.lt.s32.totalorder %s34_s19, %s34_s19 }
   0xc   :  { %p427_p3 = scmp.ne.s32.totalorder %s34_s19, %s426_s27  ;;  %p432_p5 = scmp.lt.s32.totalorder %s426_s27, %s426_s27 }
   0xe   :  { %p433_p6 = por %p432_p5, %p431_p4 }
  0x10   :  { %p434_p7 = pnand %p433_p6, %p427_p3 }
  0x12   :  { %437 = shalt.err (!%p434_p7)
}
  0x13   :  { %s559_s28 = smov 128   ;;  %s560_s29 = smov 8  }
  0x14   :  { %39 = dma.hbm_to_vmem [thread:$0]  %s703_s1, 256, %s34_s19, [#allocation6], %s559_s28, %s559_s28, %s560_s29  }
  0x15   :  { %s561_s7 = smov [#allocation2]   ;;  %s438_s11 = scalar_lea.hbm %s702_s0, 128 }
  0x16   :  { %s21_s8 = sshll.u32 %s561_s7, 4  ;;  %p439_p8 = scmp.ne.s32.totalorder %s702_s0, %s438_s11  ;;  %s22_s8 = int_to_ptr.vmem [resolvable:$true] %s21_s8 }
  0x17   :  { %p442_p9 = scmp.lt.u32.totalorder %s438_s11, %s702_s0 }
  0x19   :  { %p444_p10 = pnand %p442_p9, %p439_p8 }
  0x1b   :  { %447 = shalt.err (!%p444_p10)
}
  0x1c   :  { %s448_s16 = scalar_lea.vmem %s22_s8, 128  ;;  %p453_p12 = scmp.lt.s32.totalorder %s22_s8, %s22_s8 }
  0x1d   :  { %p449_p11 = scmp.ne.s32.totalorder %s22_s8, %s448_s16  ;;  %p454_p13 = scmp.lt.s32.totalorder %s448_s16, %s448_s16 }
  0x1f   :  { %p455_p0 = por %p454_p13, %p453_p12 }
  0x21   :  { %p456_p1 = pnand %p455_p0, %p449_p11 }
  0x23   :  { %459 = shalt.err (!%p456_p1)
}
  0x24   :  { %s562_s1 = smov 64   ;;  %s563_s17 = smov 4  }
  0x25   :  { %27 = dma.hbm_to_vmem [thread:$0]  %s702_s0, 128, %s22_s8, [#allocation3], %s562_s1, %s562_s1, %s563_s17  }
  0x26   :  { %s564_s20 = smov [#allocation7]   ;;  %s565_s22 = smov [#allocation8]  }
  0x27   :  { %s46_s21 = sshll.u32 %s564_s20, 4  ;;  %s55_s23 = sshll.u32 %s565_s22, 4  ;;  %s47_s21 = int_to_ptr.vmem [resolvable:$true] %s46_s21  ;;  %s630_s23 = int_to_ptr.vmem [resolvable:$true] %s55_s23 }
  0x28   :  { %s460_s26 = scalar_lea.hbm %s704_s2, 128 }
  0x29   :  { %p461_p2 = scmp.ne.s32.totalorder %s704_s2, %s460_s26  ;;  %p464_p3 = scmp.lt.u32.totalorder %s460_s26, %s704_s2 }
  0x2b   :  { %p466_p4 = pnand %p464_p3, %p461_p2 }
  0x2d   :  { %469 = shalt.err (!%p466_p4)
}
  0x2e   :  { %s470_s0 = scalar_lea.vmem %s47_s21, 128  ;;  %p475_p6 = scmp.lt.s32.totalorder %s47_s21, %s47_s21 }
  0x2f   :  { %p471_p5 = scmp.ne.s32.totalorder %s47_s21, %s470_s0  ;;  %p476_p7 = scmp.lt.s32.totalorder %s470_s0, %s470_s0 }
  0x31   :  { %p477_p8 = por %p476_p7, %p475_p6 }
  0x33   :  { %p478_p9 = pnand %p477_p8, %p471_p5 }
  0x35   :  { %481 = shalt.err (!%p478_p9)
}
  0x36   :  { %49 = dma.hbm_to_vmem [thread:$0]  %s704_s2, 128, %s47_s21, [#allocation6]  }
  0x37   :  { %s482_s12 = scalar_lea.hbm %s705_s3, 256 }
  0x38   :  { %p483_p10 = scmp.ne.s32.totalorder %s705_s3, %s482_s12  ;;  %p486_p11 = scmp.lt.u32.totalorder %s482_s12, %s705_s3 }
  0x3a   :  { %p488_p12 = pnand %p486_p11, %p483_p10 }
  0x3c   :  { %491 = shalt.err (!%p488_p12)
}
  0x3d   :  { %s492_s1 = scalar_lea.vmem %s630_s23, 256  ;;  %p497_p0 = scmp.lt.s32.totalorder %s630_s23, %s630_s23 }
  0x3e   :  { %p493_p13 = scmp.ne.s32.totalorder %s630_s23, %s492_s1  ;;  %p498_p1 = scmp.lt.s32.totalorder %s492_s1, %s492_s1 }
  0x40   :  { %p499_p2 = por %p498_p1, %p497_p0 }
  0x42   :  { %p500_p3 = pnand %p499_p2, %p493_p13 }
  0x44   :  { %503 = shalt.err (!%p500_p3)
}
  0x45   :  { %61 = dma.hbm_to_vmem [thread:$0]  %s705_s3, 256, %s630_s23, [#allocation9], %s559_s28, %s559_s28, %s560_s29  }
  0x46   :  { %548 = dma.done.wait [#allocation3], 128  }
  0x47   :  { %549 = vsyncadd [#allocation3], 4294967168 }
  0x48   :  { %550 = dma.done.wait [#allocation6], 384  }
  0x49   :  { %551 = vsyncadd [#allocation6], 4294966912 }
  0x4a   :  { %552 = dma.done.wait [#allocation9], 256  }
  0x4b   :  { %553 = vsyncadd [#allocation9], 4294967040  ;;  %v566_v0 = vmov 0   ;;  %v567_v1 = vmov 4   ;;  %v568_v2 = vmov 8   ;;  %vm96_vm0 = vcmask 1041408  }
  0x4c   :  { %135 = vmatprep.mubr.bf16.mxu0 %v566_v0  ;;  %195 = vmatprep.mubr.bf16.mxu1 %v566_v0  ;;  %vm230_vm1 = vcmask 1043456   ;;  %v380_v3 = vld.sshfl [vmem:[#allocation2] sm:$0x33 pattern:$0x76325410]  ;;  %v75_v4 = vld [vmem:[#allocation7] sm:$0xff] }
  0x4d   :  { %409 = vset.pattern.permute.xlu0 %v567_v1  ;;  %411 = vset.pattern.permute.xlu1 %v568_v2  ;;  %v220_v5 = vld [vmem:[#allocation5] sm:$0xff]  ;;  %v91_v6 = vcombine.high %v380_v3, %v380_v3  ;;  %v383_v7 = vld.sshfl [vmem:[#allocation2 + $0x4] sm:$0x33 pattern:$0x76325410]  ;;  %v98_v8 = vsel %vm96_vm0, %v380_v3, 0  ;;  %v76_v16 = vpack.c.bf16 %v75_v4, %v75_v4 }
  0x4e   :  { %v387_v9 = vcombine.high %v220_v5, %v220_v5  ;;  %v285_v10 = vld [vmem:[#allocation5 + $0x8] sm:$0xff]  ;;  %79 = vperm.xlu0 %409, %v75_v4   ;;  %v156_v11 = vcombine.high %v383_v7, %v383_v7  ;;  %v158_v12 = vsel %vm96_vm0, %v383_v7, 0  ;;  %v386_v14 = vcombine.low %v220_v5, %v220_v5  ;;  %v208_v15 = vld [vmem:[#allocation8 + $0x8] sm:$0xff]  ;;  %v207_v20 = vld [vmem:[#allocation8] sm:$0xff]  ;;  %s569_s3 = smov [#allocation10]  }
  0x4f   :  { %v391_v13 = vcombine.high %v285_v10, %v285_v10  ;;  %381 = vmatprep.subr.msk.bf16.mxu0 %vm96_vm0, %v91_v6  ;;  %v390_v17 = vcombine.low %v285_v10, %v285_v10  ;;  %217 = vperm.xlu1 %411, %v208_v15   ;;  %vm92_vm2 = vcmask 31744   ;;  %v209_v21 = vpack.c.bf16 %v208_v15, %v207_v20  ;;  %s350_s28 = sshll.u32 %s569_s3, 4  ;;  %s351_s28 = int_to_ptr.vmem [resolvable:$true] %s350_s28 }
  0x50   :  { %384 = vmatprep.subr.msk.bf16.mxu1 %vm96_vm0, %v156_v11  ;;  %104 = vmatpush1.bf16.msra.mxu0 %v98_v8  ;;  %v232_v18 = vsel %vm230_vm1, %v386_v14, 0  ;;  %vm226_vm3 = vcmask 64512   ;;  %s504_s29 = scalar_lea.vmem %s351_s28, 512  ;;  %p509_p5 = scmp.lt.s32.totalorder %s351_s28, %s351_s28 }
  0x51   :  { %164 = vmatpush1.bf16.msra.mxu1 %v158_v12  ;;  %388 = vmatprep.subr.msk.bf16.mxu0 %vm230_vm1, %v387_v9  ;;  %v292_v19 = vsel %vm230_vm1, %v390_v17, 0  ;;  %p505_p4 = scmp.ne.s32.totalorder %s351_s28, %s504_s29  ;;  %p510_p6 = scmp.lt.s32.totalorder %s504_s29, %s504_s29 }
  0x52   :  { %392 = vmatprep.subr.msk.bf16.mxu1 %vm230_vm1, %v391_v13  ;;  %410 = vset.pattern.permute.xlu0 %v568_v2 }
  0x53   :  { %382 = vmatmul.mubr.msk.bf16.vlgmr.msra.gmra.mrb[0].mxu0 %vm92_vm2, %v76_v16  ;;  %212 = vperm.xlu0 %410, %v207_v20   ;;  %p511_p7 = por %p510_p6, %p509_p5 }
  0x54   :  { %385 = vmatmul.mubr.msk.bf16.vlgmr.msra.gmra.mrb[0].mxu1 %vm92_vm2, %v76_v16  ;;  %238 = vmatpush1.bf16.msra.mxu0 %v232_v18 }
  0x55   :  { %298 = vmatpush1.bf16.msra.mxu1 %v292_v19  ;;  %269 = vmatprep.mubr.bf16.mxu0 %v566_v0  ;;  %p512_p8 = pnand %p511_p7, %p505_p4 }
  0x56   :  { %329 = vmatprep.mubr.bf16.mxu1 %v566_v0 }
  0x5b   :  { %389 = vmatmul.mubr.msk.bf16.vlgmr.msra.gmra.mrb[4].mxu0 %vm226_vm3, %v209_v21 }
  0x5c   :  { %393 = vmatmul.mubr.msk.bf16.vlgmr.msra.gmra.mrb[4].mxu1 %vm226_vm3, %v209_v21 }
  0xcd   :  { %v80_v22 = vpop.permute.xlu0 %79 }
  0xd2   :  { %v213_v35 = vpop.permute.xlu0 %212 }
 0x126   :  { %v137_v23 = vpop.f32.mrb[0].mxu0 }
 0x127   :  { %v197_v24 = vpop.f32.mrb[0].mxu1  ;;  %v138_v25 = vadd.f32 %v137_v23, %v80_v22  ;;  %v139_v26 = vpop.f32.mrb[1].mxu0 }
 0x128   :  { %v198_v27 = vadd.f32 %v197_v24, %v80_v22  ;;  %v140_v28 = vadd.f32 %v139_v26, %v80_v22  ;;  %v199_v29 = vpop.f32.mrb[1].mxu1  ;;  %v141_v30 = vpop.f32.mrb[2].mxu0 }
 0x129   :  { %144 = vst [vmem:[#allocation10] sm:$0xff] %v138_v25  ;;  %v200_v31 = vadd.f32 %v199_v29, %v80_v22  ;;  %v201_v32 = vpop.f32.mrb[2].mxu1  ;;  %v142_v33 = vpop.f32.mrb[3].mxu0 }
 0x12a   :  { %205 = vst [vmem:[#allocation10 + $0x10] sm:$0xff] %v198_v27  ;;  %145 = vst [vmem:[#allocation10 + $0x8] sm:$0xff] %v140_v28  ;;  %v202_v34 = vpop.f32.mrb[3].mxu1 }
 0x12b   :  { %206 = vst [vmem:[#allocation10 + $0x18] sm:$0xff] %v200_v31 }
 0x12c   :  { %515 = shalt.err (!%p512_p8)
}
 0x12d   :  { %s516_s20 = scalar_lea.hbm %s706_s4, 512 }
 0x12e   :  { %p517_p9 = scmp.ne.s32.totalorder %s706_s4, %s516_s20  ;;  %p520_p10 = scmp.lt.u32.totalorder %s516_s20, %s706_s4 }
 0x130   :  { %p522_p11 = pnand %p520_p10, %p517_p9 }
 0x132   :  { %525 = shalt.err (!%p522_p11)
}
 0x133   :  { %s570_s25 = smov 256   ;;  %s571_s26 = smov 16   ;;  %v271_v36 = vpop.f32.mrb[4].mxu0  ;;  %v218_v37 = vpop.permute.xlu1 %217 }
 0x134   :  { %356 = dma.vmem_to_hbm [thread:$0]  %s351_s28, 512, %s706_s4, [#allocation4], %s570_s25, %s570_s25, %s571_s26   ;;  %v331_v38 = vpop.f32.mrb[4].mxu1  ;;  %v272_v39 = vadd.f32 %v271_v36, %v213_v35  ;;  %v273_v40 = vpop.f32.mrb[5].mxu0 }
 0x135   :  { %v332_v41 = vadd.f32 %v331_v38, %v213_v35  ;;  %v274_v42 = vadd.f32 %v273_v40, %v213_v35  ;;  %v333_v43 = vpop.f32.mrb[5].mxu1  ;;  %v275_v44 = vpop.f32.mrb[6].mxu0  ;;  %s572_s6 = smov [#allocation11]  }
 0x136   :  { %s362_s7 = sshll.u32 %s572_s6, 4  ;;  %280 = vst [vmem:[#allocation11] sm:$0xff] %v272_v39  ;;  %v334_v45 = vadd.f32 %v333_v43, %v213_v35  ;;  %v276_v46 = vadd.f32 %v275_v44, %v218_v37  ;;  %v335_v47 = vpop.f32.mrb[6].mxu1  ;;  %v277_v48 = vpop.f32.mrb[7].mxu0  ;;  %s363_s7 = int_to_ptr.vmem [resolvable:$true] %s362_s7 }
 0x137   :  { %341 = vst [vmem:[#allocation11 + $0x20] sm:$0xff] %v332_v41  ;;  %281 = vst [vmem:[#allocation11 + $0x8] sm:$0xff] %v274_v42  ;;  %v336_v49 = vadd.f32 %v335_v47, %v218_v37  ;;  %v278_v50 = vadd.f32 %v277_v48, %v218_v37  ;;  %v337_v51 = vpop.f32.mrb[7].mxu1  ;;  %s526_s4 = scalar_lea.vmem %s363_s7, 1024  ;;  %p531_p13 = scmp.lt.s32.totalorder %s363_s7, %s363_s7 }
 0x138   :  { %342 = vst [vmem:[#allocation11 + $0x28] sm:$0xff] %v334_v45  ;;  %282 = vst [vmem:[#allocation11 + $0x10] sm:$0xff] %v276_v46  ;;  %v338_v52 = vadd.f32 %v337_v51, %v218_v37  ;;  %p527_p12 = scmp.ne.s32.totalorder %s363_s7, %s526_s4  ;;  %p532_p0 = scmp.lt.s32.totalorder %s526_s4, %s526_s4 }
 0x139   :  { %343 = vst [vmem:[#allocation11 + $0x30] sm:$0xff] %v336_v49  ;;  %283 = vst [vmem:[#allocation11 + $0x18] sm:$0xff] %v278_v50 }
 0x13a   :  { %344 = vst [vmem:[#allocation11 + $0x38] sm:$0xff] %v338_v52  ;;  %p533_p1 = por %p532_p0, %p531_p13 }
 0x13c   :  { %p534_p2 = pnand %p533_p1, %p527_p12 }
 0x13e   :  { %537 = shalt.err (!%p534_p2)
}
 0x13f   :  { %s538_s9 = scalar_lea.hbm %s707_s5, 1024 }
 0x140   :  { %p539_p3 = scmp.ne.s32.totalorder %s707_s5, %s538_s9  ;;  %p542_p4 = scmp.lt.u32.totalorder %s538_s9, %s707_s5 }
 0x142   :  { %p544_p5 = pnand %p542_p4, %p539_p3 }
 0x144   :  { %547 = shalt.err (!%p544_p5)
}
 0x145   :  { %368 = dma.vmem_to_hbm [thread:$0]  %s363_s7, 1024, %s707_s5, [#allocation12], %s570_s25, %s570_s25, %s571_s26  }
 0x146   :  { %554 = dma.done.wait [#allocation4], 512  }
 0x147   :  { %555 = vsyncadd [#allocation4], 4294966784 }
 0x148   :  { %556 = dma.done.wait [#allocation12], 1024  }
 0x149   :  { %557 = vsyncadd [#allocation12], 4294966272 }
 0x14a   :  { %375 = vsyncpa [#allocation3], 1 }
 0x14b   :  { %376 = vsyncpa [#allocation6], 1 }
 0x14c   :  { %377 = vsyncpa [#allocation9], 1 }
 0x14d   :  { %378 = vsyncpa [#allocation4], 1 }
 0x14e   :  { %379 = vsyncpa [#allocation12], 1 }

</bundles_post_ra>
